<compile_context>
chip_gen: v7x
topology: tpu7x:2x2x1
jax: 0.10.0
libtpu: 0.0.40
codegen_flags: <defaults>
</compile_context>

<pallas_src>
import functools

import jax
import jax.numpy as jnp
from jax.experimental import pallas as pl
from jax.experimental.pallas import tpu as pltpu


# ------------------------------------------------------------------ utilities
def make_divisible(v, divisor, min_val=None):
    if min_val is None:
        min_val = divisor
    new_v = max(min_val, int(v + divisor / 2) // divisor * divisor)
    if new_v < 0.9 * v:
        new_v += divisor
    return new_v


def _largest_divisor_not_exceeding(n, cap):
    cap = max(1, min(n, cap))
    for d in range(cap, 0, -1):
        if n % d == 0:
            return d
    return 1


def _pick_batch_block(n, per_block_bytes, budget, min_steps=2):
    """Largest batch block (dividing n) whose double-buffered in+out payload
    fits `budget`, while keeping >= min_steps grid steps when possible so the
    "parallel" batch axis can be split across TensorCores on megacore parts."""
    cap = max(1, budget // (4 * per_block_bytes))
    if n >= min_steps:
        cap = min(cap, max(1, n // min_steps))
    return _largest_divisor_not_exceeding(n, cap)


def _pick_hw_strip(hw, c, itemsize, budget):
    """Largest multiple of 128 that divides HW and keeps double-buffered
    in+out strips within the budget (falls back to the full extent)."""
    cap_elems = max(128, (budget // (4 * c * itemsize)) // 128 * 128)
    best = None
    s = 128
    while s <= min(hw, cap_elems):
        if hw % s == 0:
            best = s
        s += 128
    return best if best is not None else hw


# -------------------------------------------------------------- kernel bodies
def _fc_scale(m, w1, b1, w2, b2):
    """SE excitation MLP on pooled means m: (B, C) f32 -> (B, C) scale in [0,1].

    The contractions are tiny (C*M MACs per image), so they are done as
    batched broadcast-multiply + reductions on the VPU/XLU; padded tiny
    matmuls on the MXU would buy nothing here.
    """
    # fc.reduce: 1x1 conv C -> M, + bias, ReLU.   w1: (C, M), b1: (1, M)
    y1 = jnp.sum(m[:, :, None] * w1[None, :, :], axis=1) + b1          # (B, M)
    y1 = jnp.maximum(y1, 0.0)
    # fc.expand: 1x1 conv M -> C, + bias, Hsigmoid.  w2 (OI layout): (C, M)
    y2 = jnp.sum(y1[:, None, :] * w2[None, :, :], axis=-1) + b2        # (B, C)
    return jnp.minimum(jnp.maximum(y2 + 3.0, 0.0), 6.0) * (1.0 / 6.0)


def _se_fused_kernel(x_ref, w1_ref, b1_ref, w2_ref, b2_ref, o_ref, *, inv_hw):
    """Fast path: B_BLK whole images per grid step, single HBM pass."""
    xf = x_ref[...].astype(jnp.float32)                                # (B, C, HW)
    m = jnp.sum(xf, axis=-1) * inv_hw                                  # (B, C)
    y = _fc_scale(m, w1_ref[...], b1_ref[...], w2_ref[...], b2_ref[...])
    o_ref[...] = (xf * y[:, :, None]).astype(o_ref.dtype)


def _se_pool_fc_kernel(x_ref, w1_ref, b1_ref, w2_ref, b2_ref, y_ref, acc_ref,
                       *, inv_hw):
    """Strip-path pass 1: accumulate pooled sums over HW strips, emit scale."""
    s = pl.program_id(1)

    @pl.when(s == 0)
    def _():
        acc_ref[...] = jnp.zeros_like(acc_ref)

    acc_ref[...] += jnp.sum(x_ref[...].astype(jnp.float32), axis=-1)   # (B, C)

    @pl.when(s == pl.num_programs(1) - 1)
    def _():
        m = acc_ref[...] * inv_hw
        y = _fc_scale(m, w1_ref[...], b1_ref[...], w2_ref[...], b2_ref[...])
        y_ref[...] = y[:, :, None]                                     # (B, C, 1)


def _se_apply_kernel(x_ref, y_ref, o_ref):
    """Strip-path pass 2: channel-wise rescale of one HW strip."""
    xf = x_ref[...].astype(jnp.float32)                                # (B, C, S)
    o_ref[...] = (xf * y_ref[...]).astype(o_ref.dtype)                 # y: (B, C, 1)


# ------------------------------------------------------------------- wrappers
_DEFAULT_BLOCK_BUDGET = 24 * 1024 * 1024   # pipelined in+out payload (v7x-safe)
_VMEM_LIMIT_BYTES = 48 * 1024 * 1024       # > scoped defaults, < v7x physical


def _weight_specs(M, C, index_map):
    return [
        pl.BlockSpec((C, M), index_map),   # w1t (C, M)
        pl.BlockSpec((1, M), index_map),   # b1  (1, M)
        pl.BlockSpec((C, M), index_map),   # w2t (C, M)  (OI layout)
        pl.BlockSpec((1, C), index_map),   # b2  (1, C)
    ]


def _se_fused(x, w1t, b1, w2t, b2, inv_hw, budget):
    N, C, HW = x.shape
    M = w1t.shape[1]
    itemsize = jnp.dtype(x.dtype).itemsize
    b_blk = _pick_batch_block(N, C * HW * itemsize, budget)

    kernel = functools.partial(_se_fused_kernel, inv_hw=inv_hw)
    return pl.pallas_call(
        kernel,
        out_shape=jax.ShapeDtypeStruct((N, C, HW), x.dtype),
        grid_spec=pltpu.PrefetchScalarGridSpec(
            num_scalar_prefetch=0,
            grid=(N // b_blk,),
            in_specs=[pl.BlockSpec((b_blk, C, HW), lambda n: (n, 0, 0))]
                     + _weight_specs(M, C, lambda n: (0, 0)),
            out_specs=pl.BlockSpec((b_blk, C, HW), lambda n: (n, 0, 0)),
        ),
        compiler_params=pltpu.CompilerParams(
            dimension_semantics=("parallel",),
            vmem_limit_bytes=_VMEM_LIMIT_BYTES),
    )(x, w1t, b1, w2t, b2)


def _se_stripped(x, w1t, b1, w2t, b2, inv_hw, budget):
    """Two-pass fallback for images too large for a single VMEM block."""
    N, C, HW = x.shape
    M = w1t.shape[1]
    itemsize = jnp.dtype(x.dtype).itemsize
    hw_strip = _pick_hw_strip(HW, C, itemsize, budget)
    n_strips = HW // hw_strip
    b_blk = _pick_batch_block(N, C * hw_strip * itemsize, budget)
    grid = (N // b_blk, n_strips)

    # ---- pass 1: pooled means -> excitation scales (N, C, 1) ----
    pool_kernel = functools.partial(_se_pool_fc_kernel, inv_hw=inv_hw)
    scales = pl.pallas_call(
        pool_kernel,
        out_shape=jax.ShapeDtypeStruct((N, C, 1), jnp.float32),
        grid_spec=pltpu.PrefetchScalarGridSpec(
            num_scalar_prefetch=0,
            grid=grid,
            in_specs=[pl.BlockSpec((b_blk, C, hw_strip), lambda b, s: (b, 0, s))]
                     + _weight_specs(M, C, lambda b, s: (0, 0)),
            out_specs=pl.BlockSpec((b_blk, C, 1), lambda b, s: (b, 0, 0)),
            scratch_shapes=[pltpu.VMEM((b_blk, C), jnp.float32)],
        ),
        compiler_params=pltpu.CompilerParams(
            dimension_semantics=("parallel", "arbitrary"),
            vmem_limit_bytes=_VMEM_LIMIT_BYTES),
    )(x, w1t, b1, w2t, b2)

    # ---- pass 2: apply the per-channel scale strip by strip ----
    return pl.pallas_call(
        _se_apply_kernel,
        out_shape=jax.ShapeDtypeStruct((N, C, HW), x.dtype),
        grid_spec=pltpu.PrefetchScalarGridSpec(
            num_scalar_prefetch=0,
            grid=grid,
            in_specs=[
                pl.BlockSpec((b_blk, C, hw_strip), lambda b, s: (b, 0, s)),
                pl.BlockSpec((b_blk, C, 1), lambda b, s: (b, 0, 0)),
            ],
            out_specs=pl.BlockSpec((b_blk, C, hw_strip), lambda b, s: (b, 0, s)),
        ),
        compiler_params=pltpu.CompilerParams(
            dimension_semantics=("parallel", "parallel"),
            vmem_limit_bytes=_VMEM_LIMIT_BYTES),
    )(x, scales)


def se_forward(x_nchw, params, *, block_budget_bytes=_DEFAULT_BLOCK_BUDGET,
               force_strip_path=False):
    """x_nchw: (N, C, H, W). Returns (N, C, H, W) = SEModule(x)."""
    w1t, b1, w2t, b2 = params
    N, C, H, W = x_nchw.shape
    HW = H * W
    itemsize = jnp.dtype(x_nchw.dtype).itemsize

    x = x_nchw.reshape(N, C, HW)          # contiguous (free); spatial on lanes
    inv_hw = 1.0 / float(HW)

    fits_fused = 4 * C * HW * itemsize <= block_budget_bytes   # in+out, 2x-buffered
    if fits_fused and not force_strip_path:
        out = _se_fused(x, w1t, b1, w2t, b2, inv_hw, block_budget_bytes)
    else:
        out = _se_stripped(x, w1t, b1, w2t, b2, inv_hw, block_budget_bytes)
    return out.reshape(N, C, H, W)


# ------------------------------------------------------------ params & reference
def make_params(key, channel):
    """Deterministic synthetic SEModule parameters (PyTorch layouts + kernel repack)."""
    num_mid = make_divisible(channel // 4, 8)
    k1, k2, k3, k4 = jax.random.split(key, 4)
    # PyTorch conv weights: OIHW with 1x1 kernels, with bias.
    w1_oihw = 0.1 * jax.random.normal(k1, (num_mid, channel, 1, 1), jnp.float32)
    b1 = 0.1 * jax.random.normal(k2, (num_mid,), jnp.float32)
    w2_oihw = 0.1 * jax.random.normal(k3, (channel, num_mid, 1, 1), jnp.float32)
    b2 = 0.1 * jax.random.normal(k4, (channel,), jnp.float32)

    # Repack host-side so no transposes/reshapes happen inside the kernel:
    w1t = jnp.transpose(w1_oihw[:, :, 0, 0], (1, 0))           # (C, M)
    w2t = w2_oihw[:, :, 0, 0]                                   # (C, M) OI layout
    kernel_params = (w1t, b1.reshape(1, num_mid), w2t, b2.reshape(1, channel))
    torch_like = (w1_oihw, b1, w2_oihw, b2)
    return kernel_params, torch_like


def reference_forward(x, torch_like):
    """Pure-JAX NCHW reference matching the PyTorch SEModule."""
    w1_oihw, b1, w2_oihw, b2 = torch_like
    y = jnp.mean(x, axis=(2, 3))                                # (N, C)
    y = jnp.maximum(y @ w1_oihw[:, :, 0, 0].T + b1, 0.0)        # reduce + ReLU
    y = y @ w2_oihw[:, :, 0, 0].T + b2                          # expand
    y = jnp.clip(y + 3.0, 0.0, 6.0) / 6.0                       # Hsigmoid
    return x * y[:, :, None, None]


if __name__ == "__main__":
    key = jax.random.PRNGKey(0)
    kx, kp = jax.random.split(key)

    N, C, H, W = 2, 4, 16, 16
    x = jax.random.normal(kx, (N, C, H, W), jnp.float32)
    params, torch_like = make_params(kp, C)
    ref = reference_forward(x, torch_like)

    # Fast fused path (single HBM pass, batched blocks, >=2 grid steps).
    out = jax.block_until_ready(se_forward(x, params))
    assert out.shape == (N, C, H, W)
    err = float(jnp.max(jnp.abs(out - ref)))
    assert jnp.allclose(out, ref, atol=1e-5, rtol=1e-5), err

    # Strip-tiled fallback path: force a tiny VMEM budget so the 256-lane
    # spatial axis is split into two 128-lane strips (exercises the pooled-sum
    # accumulator + two-pass apply used for MobileNet-scale feature maps).
    out2 = jax.block_until_ready(se_forward(x, params, block_budget_bytes=8 * 1024))
    err2 = float(jnp.max(jnp.abs(out2 - ref)))
    assert jnp.allclose(out2, ref, atol=1e-5, rtol=1e-5), err2

    print("KERNEL_OK")
</pallas_src>

<mosaic_0001>
module attributes {stable_mosaic.version = 11 : i64} {
  func.func @_se_fused_kernel(%arg0: i32, %arg1: memref<1x4x256xf32, #tpu.memory_space<vmem>>, %arg2: memref<4x8xf32, #tpu.memory_space<vmem>>, %arg3: memref<1x8xf32, #tpu.memory_space<vmem>>, %arg4: memref<4x8xf32, #tpu.memory_space<vmem>>, %arg5: memref<1x4xf32, #tpu.memory_space<vmem>>, %arg6: memref<1x4x256xf32, #tpu.memory_space<vmem>>) attributes {dimension_semantics = [#tpu.dimension_semantics<parallel>], iteration_bounds = array<i64: 2>, scalar_prefetch = 0 : i64, scratch_operands = 0 : i64, tpu.core_type = #tpu.core_type<tc>, window_params = [{transform_indices = @transform_0, window_bounds = array<i64: 1, 4, 256>}, {pipeline_mode = #tpu.pipeline_mode<synchronous>, transform_indices = @transform_1, window_bounds = array<i64: 4, 8>}, {pipeline_mode = #tpu.pipeline_mode<synchronous>, transform_indices = @transform_2, window_bounds = array<i64: 1, 8>}, {pipeline_mode = #tpu.pipeline_mode<synchronous>, transform_indices = @transform_3, window_bounds = array<i64: 4, 8>}, {pipeline_mode = #tpu.pipeline_mode<synchronous>, transform_indices = @transform_4, window_bounds = array<i64: 1, 4>}, {transform_indices = @transform_5, window_bounds = array<i64: 1, 4, 256>}]} {
    %c0 = arith.constant 0 : index
    %c0_0 = arith.constant 0 : index
    %c0_1 = arith.constant 0 : index
    %0 = vector.load %arg1[%c0, %c0_0, %c0_1] : memref<1x4x256xf32, #tpu.memory_space<vmem>>, vector<1x4x256xf32>
    %cst = arith.constant dense<0.000000e+00> : vector<1x4xf32>
    %1 = vector.multi_reduction <add>, %0, %cst [2] : vector<1x4x256xf32> to vector<1x4xf32>
    %cst_2 = arith.constant 3.906250e-03 : f32
    %2 = vector.broadcast %cst_2 : f32 to vector<1x4xf32>
    %3 = arith.mulf %1, %2 : vector<1x4xf32>
    %c0_3 = arith.constant 0 : index
    %c0_4 = arith.constant 0 : index
    %4 = vector.load %arg2[%c0_3, %c0_4] : memref<4x8xf32, #tpu.memory_space<vmem>>, vector<4x8xf32>
    %c0_5 = arith.constant 0 : index
    %c0_6 = arith.constant 0 : index
    %5 = vector.load %arg3[%c0_5, %c0_6] : memref<1x8xf32, #tpu.memory_space<vmem>>, vector<1x8xf32>
    %c0_7 = arith.constant 0 : index
    %c0_8 = arith.constant 0 : index
    %6 = vector.load %arg4[%c0_7, %c0_8] : memref<4x8xf32, #tpu.memory_space<vmem>>, vector<4x8xf32>
    %c0_9 = arith.constant 0 : index
    %c0_10 = arith.constant 0 : index
    %7 = vector.load %arg5[%c0_9, %c0_10] : memref<1x4xf32, #tpu.memory_space<vmem>>, vector<1x4xf32>
    %8 = vector.shape_cast %3 : vector<1x4xf32> to vector<1x4x1xf32>
    %9 = vector.shape_cast %4 : vector<4x8xf32> to vector<1x4x8xf32>
    %10 = vector.broadcast %8 : vector<1x4x1xf32> to vector<1x4x8xf32>
    %11 = arith.mulf %10, %9 : vector<1x4x8xf32>
    %cst_11 = arith.constant dense<0.000000e+00> : vector<1x8xf32>
    %12 = vector.multi_reduction <add>, %11, %cst_11 [1] : vector<1x4x8xf32> to vector<1x8xf32>
    %13 = arith.addf %12, %5 : vector<1x8xf32>
    %cst_12 = arith.constant 0.000000e+00 : f32
    %14 = vector.broadcast %cst_12 : f32 to vector<1x8xf32>
    %15 = arith.maximumf %13, %14 : vector<1x8xf32>
    %16 = vector.shape_cast %15 : vector<1x8xf32> to vector<1x1x8xf32>
    %17 = vector.shape_cast %6 : vector<4x8xf32> to vector<1x4x8xf32>
    %18 = vector.broadcast %16 : vector<1x1x8xf32> to vector<1x4x8xf32>
    %19 = arith.mulf %18, %17 : vector<1x4x8xf32>
    %cst_13 = arith.constant dense<0.000000e+00> : vector<1x4xf32>
    %20 = vector.multi_reduction <add>, %19, %cst_13 [2] : vector<1x4x8xf32> to vector<1x4xf32>
    %21 = arith.addf %20, %7 : vector<1x4xf32>
    %cst_14 = arith.constant 3.000000e+00 : f32
    %22 = vector.broadcast %cst_14 : f32 to vector<1x4xf32>
    %23 = arith.addf %21, %22 : vector<1x4xf32>
    %cst_15 = arith.constant 0.000000e+00 : f32
    %24 = vector.broadcast %cst_15 : f32 to vector<1x4xf32>
    %25 = arith.maximumf %23, %24 : vector<1x4xf32>
    %cst_16 = arith.constant 6.000000e+00 : f32
    %26 = vector.broadcast %cst_16 : f32 to vector<1x4xf32>
    %27 = arith.minimumf %25, %26 : vector<1x4xf32>
    %cst_17 = arith.constant 0.166666672 : f32
    %28 = vector.broadcast %cst_17 : f32 to vector<1x4xf32>
    %29 = arith.mulf %27, %28 : vector<1x4xf32>
    %30 = vector.shape_cast %29 : vector<1x4xf32> to vector<1x4x1xf32>
    %31 = vector.broadcast %30 : vector<1x4x1xf32> to vector<1x4x256xf32>
    %32 = arith.mulf %0, %31 : vector<1x4x256xf32>
    %c0_18 = arith.constant 0 : index
    %c0_19 = arith.constant 0 : index
    %c0_20 = arith.constant 0 : index
    %33 = vector.load %arg6[%c0_18, %c0_19, %c0_20] : memref<1x4x256xf32, #tpu.memory_space<vmem>>, vector<1x4x256xf32>
    tpu.vector_store %arg6[%c0_18, %c0_19, %c0_20], %32 {strides = array<i32>} : memref<1x4x256xf32, #tpu.memory_space<vmem>>, vector<1x4x256xf32>,
    return
  }
  func.func @transform_0(%arg0: i32) -> (i32, i32, i32) {
    %c0_i32 = arith.constant 0 : i32
    %c0_i32_0 = arith.constant 0 : i32
    %c0_i32_1 = arith.constant 0 : i32
    return %arg0, %c0_i32, %c0_i32_0 : i32, i32, i32
  }
  func.func @transform_1(%arg0: i32) -> (i32, i32) {
    %c0_i32 = arith.constant 0 : i32
    %c0_i32_0 = arith.constant 0 : i32
    %c0_i32_1 = arith.constant 0 : i32
    return %c0_i32, %c0_i32_0 : i32, i32
  }
  func.func @transform_2(%arg0: i32) -> (i32, i32) {
    %c0_i32 = arith.constant 0 : i32
    %c0_i32_0 = arith.constant 0 : i32
    %c0_i32_1 = arith.constant 0 : i32
    return %c0_i32, %c0_i32_0 : i32, i32
  }
  func.func @transform_3(%arg0: i32) -> (i32, i32) {
    %c0_i32 = arith.constant 0 : i32
    %c0_i32_0 = arith.constant 0 : i32
    %c0_i32_1 = arith.constant 0 : i32
    return %c0_i32, %c0_i32_0 : i32, i32
  }
  func.func @transform_4(%arg0: i32) -> (i32, i32) {
    %c0_i32 = arith.constant 0 : i32
    %c0_i32_0 = arith.constant 0 : i32
    %c0_i32_1 = arith.constant 0 : i32
    return %c0_i32, %c0_i32_0 : i32, i32
  }
  func.func @transform_5(%arg0: i32) -> (i32, i32, i32) {
    %c0_i32 = arith.constant 0 : i32
    %c0_i32_0 = arith.constant 0 : i32
    %c0_i32_1 = arith.constant 0 : i32
    return %arg0, %c0_i32, %c0_i32_0 : i32, i32, i32
  }
}

</mosaic_0001>

<bundles_post_ra>
// kernel: tpu_custom_call.1
= control target key start
LH: loop header
LB: loop body
LE: loop exit
PB: predicated region body
PF: predicated region fallthrough
CT: control target
= control target key end

     0   :  { %10 = vsyncpa [#allocation3], 0  ;;  %s873_s0 = inlined_call_operand.hbm [shape: f32[2,4,256], index: 0, kind: input, shape index: {}]   ;;  %s874_s1 = inlined_call_operand.hbm [shape: f32[4,8], index: 1, kind: input, shape index: {}]   ;;  %s875_s2 = inlined_call_operand.vmem [shape: f32[1,8], index: 2, kind: input, shape index: {}]   ;;  %s876_s3 = inlined_call_operand.vmem [shape: f32[4,8], index: 3, kind: input, shape index: {}]   ;;  %s877_s4 = inlined_call_operand.vmem [shape: f32[1,4], index: 4, kind: input, shape index: {}]   ;;  %s878_s5 = inlined_call_operand.hbm [shape: f32[2,4,256], index: 5, kind: output, shape index: {}]  }
   0x1   :  { %12 = vsyncpa [#allocation3 + $0x1], 0 }
   0x2   :  { %13 = vsyncpa [#allocation6], 0 }
   0x3   :  { %14 = vsyncpa [#allocation4], 0 }
   0x4   :  { %16 = vsyncpa [#allocation4 + $0x1], 0  ;;  %s657_s18 = smov 0   ;;  %s659_s19 = smov 0  }
   0x5   :  { %s661_s20 = smov 0   ;;  %s663_s21 = smov 0  }
   0x6 LB: > { %s678_s22 = sadd.s32 4294967295, %s620_s21   ;;  %s411_s23 = sadd.s32 4294967294, %s620_s21   ;;  %s620_s21 = sphi %s663_s21, %s902_s21   ;;  %s616_s20 = sphi %s661_s20, %s901_s20   ;;  %s612_s19 = sphi %s659_s19, %s900_s19   ;;  %s608_s18 = sphi %s657_s18, %s899_s18  }
   0x7   : > { %p42_p0 = scmp.ne.s32.totalorder %s612_s19, %s608_s18  ;;  %p879_p1 = scmp.eq.s32.totalorder %s678_s22, 0 }
   0x8   : > { %p156_p3 = scmp.eq.s32.totalorder %s411_s23, 1  ;;  %p412_p5 = scmp.ge.s32.totalorder %s620_s21, 1 }
   0x9   : > { %p687_p4 = por %p879_p1, %p42_p0  ;;  %p163_p7 = scmp.lt.s32.totalorder %s620_s21, 3 }
   0xa   : > { %p692_p6 = por %p156_p3, %p42_p0  ;;  %s622_s27 = smov [#allocation5]  }
   0xb   : > { %s882_s24 = scalar_select %p687_p4, 1, 0 }
   0xc   : > { %s883_s25 = scalar_select %p692_p6, 1, 0 }
   0xd   : > { %p697_p8 = pnand %p412_p5, %p163_p7  ;;  %s176_s28 = sshll.u32 %s622_s27, 4  ;;  %s177_s28 = int_to_ptr.vmem [resolvable:$true] %s176_s28 }
   0xe   : > { %s705_s29 = sadd.s32 1, %s620_s21   ;;  %s29_s8 = sadd.s32 1, %s616_s20 }
   0xf   : > { %s884_s26 = scalar_select %p697_p8, 1, 0 }
  0x10   : > { %p438_p10 = pneg %p697_p8  ;;  %s26_s6 = ssub.s32 %s620_s21, %s705_s29 }
  0x11   : > { %p715_p12 = scmp.eq.s32.totalorder %s26_s6, 0  ;;  %s492_s11 = scalar_lea.hbm %s874_s1, 64 }
  0x12   : > { %p709_p11 = pnand %p438_p10, %p879_p1  ;;  %p493_p0 = scmp.ne.s32.totalorder %s874_s1, %s492_s11 }
  0x13   : > { %s886_s7 = scalar_select %p715_p12, 1, 0 }
  0x14   : > { %p494_p3 = pneg %p709_p11  ;;  %p499_p10 = scmp.lt.u32.totalorder %s492_s11, %s874_s1 }
  0x16   : > { %p495_p5 = pnand %p494_p3, %p493_p0 }
  0x18   : > { %p496_p7 = pneg %p495_p5 }
  0x1a   : > { %p501_p9 = pnand %p499_p10, %p496_p7 }
  0x1c   : > { %504 = shalt.err (!%p501_p9)
}
  0x1d   : > { %s505_s16 = scalar_lea.vmem %s177_s28, 64  ;;  %p513_p6 = scmp.lt.s32.totalorder %s177_s28, %s177_s28 }
  0x1e   : > { %p506_p1 = scmp.ne.s32.totalorder %s177_s28, %s505_s16  ;;  %p514_p4 = scmp.lt.s32.totalorder %s505_s16, %s505_s16 }
  0x20   : > { %p508_p2 = pnand %p506_p1, %p494_p3  ;;  %p515_p8 = por %p514_p4, %p513_p6 }
  0x22   : > { %p509_p13 = pneg %p508_p2 }
  0x24   : > { %p516_p12 = pnand %p515_p8, %p509_p13 }
  0x26   : > { %519 = shalt.err (!%p516_p12)
}
  0x27   : > { %441 = dma.hbm_to_vmem [thread:$0]  (!%p709_p11), %s874_s1, 64, %s177_s28, [#allocation6]  }
  0x28   : > { %p887_p1 = scmp.ne.s32.totalorder %s886_s7, 0  ;;  %p37_p2 = scmp.eq.s32.totalorder %s620_s21, 0 }
  0x29   : > { %p888_p4 = scmp.ne.s32.totalorder %s616_s20, %s612_s19  ;;  %p889_p6 = scmp.eq.s32.totalorder %s678_s22, 1 }
  0x2a   : > { %s741_s27 = scalar_select %p887_p1, %s616_s20, %s29_s8  }
  0x2b   : > { %p749_p8 = por %p889_p6, %p888_p4  ;;  %p451_p9 = scmp.lt.s32.totalorder %s620_s21, 2 }
  0x2c   : > { %s196_s6 = sand.u32 1, %s616_s20   ;;  %p891_p12 = pmov %p888_p4 }
  0x2d   : > { %s415_s9 = sshll.u32 %s196_s6, 3  ;;  %s428_s10 = sshll.u32 %s620_s21, 7 }
  0x2e   : > { %p38_p13 = por %p37_p2, %p891_p12  ;;  %s762_s28 = scalar_lea.hbm %s873_s0, %s428_s10 }
  0x2f   : > { %s200_s7 = scalar_lea.vmem [#allocation2], %s415_s9  ;;  %s197_s14 = scalar_lea.sflag [#allocation3], %s196_s6 }
  0x30   : > { %s208_s8 = sshll.u32 %s200_s7, 4  ;;  %p764_p11 = pnand %p451_p9, %p38_p13  ;;  %s768_s8 = int_to_ptr.vmem [resolvable:$true] %s208_s8 }
  0x31   : > { %s520_s15 = scalar_lea.hbm %s762_s28, 128  ;;  %s525_s23 = scalar_lea.hbm %s873_s0, 256 }
  0x32   : > { %p521_p0 = scmp.ne.s32.totalorder %s762_s28, %s520_s15  ;;  %p522_p3 = pneg %p764_p11 }
  0x33   : > { %p526_p10 = scmp.lt.u32.totalorder %s762_s28, %s873_s0  ;;  %p527_p1 = scmp.lt.u32.totalorder %s525_s23, %s520_s15 }
  0x34   : > { %p523_p5 = pnand %p522_p3, %p521_p0  ;;  %p529_p4 = scmp.lt.u32.totalorder %s520_s15, %s762_s28 }
  0x35   : > { %p528_p2 = por %p527_p1, %p526_p10 }
  0x36   : > { %p524_p7 = pneg %p523_p5 }
  0x37   : > { %p530_p6 = por %p529_p4, %p528_p2 }
  0x39   : > { %p531_p9 = pnand %p530_p6, %p524_p7 }
  0x3b   : > { %534 = shalt.err (!%p531_p9)
}
  0x3c   : > { %s535_s6 = scalar_lea.vmem %s768_s8, 128  ;;  %s623_s11 = smov [#allocation2]  }
  0x3d   : > { %p536_p12 = scmp.ne.s32.totalorder %s768_s8, %s535_s6  ;;  %s540_s12 = sshll.u32 %s623_s11, 4  ;;  %s541_s12 = int_to_ptr.vmem [resolvable:$false] %s540_s12 }
  0x3e   : > { %s542_s7 = scalar_lea.vmem %s541_s12, 256  ;;  %p543_p5 = scmp.lt.s32.totalorder %s768_s8, %s541_s12 }
  0x3f   : > { %p538_p13 = pnand %p536_p12, %p522_p3  ;;  %p544_p10 = scmp.lt.s32.totalorder %s542_s7, %s535_s6 }
  0x41   : > { %p539_p0 = pneg %p538_p13  ;;  %p545_p1 = por %p544_p10, %p543_p5 }
  0x43   : > { %p546_p2 = pnand %p545_p1, %p539_p0 }
  0x45   : > { %549 = shalt.err (!%p546_p2)
}
  0x46   : > { %445 = dma.hbm_to_vmem [thread:$0]  (!%p764_p11), %s762_s28, 128, %s768_s8, %s197_s14  }
  0x47   : > { %p893_p7 = scmp.ne.s32.totalorder %s884_s26, 0 }
  0x48   : > { %s798_s15 = sand.u32 (!%p893_p7), 1, %s612_s19   ;;  %p894_p3 = scmp.ne.s32.totalorder (!%p893_p7), %s882_s24, 0 }
  0x49   : > { %217 = sbr.rel (%p893_p7) target bundleno = 556 (0x22c), region = 40  ;;  %s419_s16 = sshll.u32 (!%p893_p7), %s798_s15, 3 }
  0x4a   : > { %s220_s17 = scalar_lea.sflag (!%p893_p7), [#allocation3], %s798_s15  ;;  %s223_s23 = scalar_lea.vmem (!%p893_p7), [#allocation2], %s419_s16 }
  0x50   : > { %595 = dma.done.wait (%p894_p3), %s220_s17, 128  }
  0x51   : > { %597 = vsyncadd (%p894_p3), %s220_s17, 4294967168  ;;  %p895_p11 = scmp.eq.s32.totalorder %s678_s22, 0 }
  0x53   : > { %599 = dma.done.wait (%p895_p11), [#allocation6], 64   ;;  %p896_p4 = pmov %p895_p11 }
  0x54   : > { %vm258_vm0 = vcmask 1043456   ;;  %v254_v0 = vld [vmem:[%s223_s23] sm:$0xff]  ;;  %v265_v6 = vld [vmem:[#allocation5] sm:$0xf]  ;;  %vm270_vm1 = vcmask 60416   ;;  %v280_v14 = vlaneseq  ;;  %v624_v27 = vmov 0  }
  0x55   : > { %601 = vsyncadd (%p896_p4), [#allocation6], 4294967232  ;;  %v256_v1 = vcombine.high %v254_v0, %v254_v0  ;;  %v259_v2 = vsel %vm258_vm0, %v254_v0, 0.0  ;;  %v422_v5 = vld [vmem:[%s877_s4] ss:$0 sm:$0xff]  ;;  %489 = vset.pattern.permute.xlu1 %v624_v27  ;;  %490 = vset.pattern.permute.xlu0 %v624_v27  ;;  %s429_s9 = sshll.u32 %s678_s22, 7 }
  0x56   : > { %294 = vbcast.lane.b32.xlu1 %v422_v5, 256  ;;  %v281_v17 = vshrl.u32 %v280_v14, 7  ;;  %v266_v18 = vld [vmem:[%s875_s2] sm:$0x1]  ;;  %v625_v35 = vmov 839922192   ;;  %s829_s7 = scalar_lea.hbm %s878_s5, %s429_s9 }
  0x57   : > { %v260_v3 = vsel %vm258_vm0, %v256_v1, 0.0  ;;  %v267_v23 = vld [vmem:[%s876_s3] sm:$0xf]  ;;  %v307_v36 = vunpack.c.l.s4 %v625_v35  ;;  %s253_s10 = scalar_lea.vmem [#allocation7], %s419_s16  ;;  %s317_s17 = scalar_lea.sflag [#allocation4], %s798_s15 }
  0x58   : > { %v261_v4 = vadd.f32 %v260_v3, %v259_v2  ;;  %v282_v21 = vsub.s32 0, %v281_v17  ;;  %s331_s6 = sshll.u32 %s253_s10, 4  ;;  %s626_s22 = smov [#allocation7]   ;;  %s831_s6 = int_to_ptr.vmem [resolvable:$true] %s331_s6 }
  0x59   : > { %v308_v37 = vunpack.c.0.s8 %v307_v36  ;;  %s550_s23 = scalar_lea.vmem %s831_s6, 128  ;;  %s554_s16 = sshll.u32 %s626_s22, 4  ;;  %s555_s16 = int_to_ptr.vmem [resolvable:$false] %s554_s16 }
  0x5a   : > { %262 = vadd.xlane.f32.xlu0 %v261_v4  ;;  %p551_p6 = scmp.ne.s32.totalorder %s831_s6, %s550_s23  ;;  %s556_s26 = scalar_lea.vmem %s555_s16, 256 }
  0x5b   : > { %v311_v38 = vsub.s32 %v308_v37, %v281_v17  ;;  %p557_p13 = scmp.lt.s32.totalorder %s831_s6, %s555_s16  ;;  %p558_p0 = scmp.lt.s32.totalorder %s556_s26, %s550_s23 }
  0x5c   : > { %p552_p9 = pnand %p551_p6, %p749_p8 }
  0x5d   : > { %p559_p5 = por %p558_p0, %p557_p13 }
  0x5e   : > { %p553_p12 = pneg %p552_p9 }
  0x60   : > { %p560_p10 = pnand %p559_p5, %p553_p12 }
  0xc8   : > { %v295_v28 = vpop.permute.xlu1 %294 }
  0xe7   : > { %v263_v7 = vpop.xlane.xlu0 %262 }
  0xe8   : > { %v264_v8 = vmul.f32 0.00390625, %v263_v7 }
  0xea   : > { %v269_v9 = vmul.f32 %v265_v6, %v264_v8 }
  0xec   : > { %v271_v10 = vsel %vm270_vm1, %v269_v9, 0.0 }
  0xed   : > { %v272_v11 = vrot.slane %v271_v10, 4 }
  0xef   : > { %v273_v12 = vadd.f32 %v272_v11, %v271_v10 }
  0xf1   : > { %v274_v13 = vrot.slane %v273_v12, 2 }
  0xf3   : > { %v275_v15 = vadd.f32 %v274_v13, %v273_v12 }
  0xf5   : > { %v276_v16 = vrot.slane %v275_v15, 1 }
  0xf7   : > { %v277_v19 = vadd.f32 %v276_v16, %v275_v15 }
  0xf9   : > { %v278_v20 = vadd.f32 %v277_v19, %v266_v18 }
  0xfb   : > { %v279_v22 = vmax.f32 %v278_v20, 0.0 }
  0xfd   : > { %v283_v24 = vrot.slane %v279_v22, %v282_v21 }
  0xff   : > { %v284_v25 = vmul.f32 %v283_v24, %v267_v23 }
 0x101   : > { %v285_v26 = vsel %vm270_vm1, %v284_v25, 0.0 }
 0x102   : > { %286 = vadd.xlane.f32.xlu0 %v285_v26 }
 0x18f   : > { %v287_v29 = vpop.xlane.xlu0 %286 }
 0x190   : > { %v297_v30 = vadd.f32 %v295_v28, %v287_v29 }
 0x192   : > { %v298_v31 = vadd.f32 3.0, %v297_v30 }
 0x194   : > { %v299_v32 = vmax.f32 %v298_v31, 0.0 }
 0x196   : > { %v300_v33 = vmin.f32 %v299_v32, 6.0 }
 0x198   : > { %v301_v34 = vmul.f32 0.16666667, %v300_v33 }
 0x19a   : > { %304 = vperm.xlu1 %489, %v301_v34  }
 0x219   : > { %v305_v39 = vpop.permute.xlu1 %304 }
 0x21a   : > { %v312_v40 = vrot.slane %v305_v39, %v311_v38 }
 0x21c   : > { %v314_v41 = vmul.f32 %v312_v40, %v254_v0 }
 0x21e   : > { %315 = vst [vmem:[%s253_s10] sm:$0xff] %v314_v41 }
 0x21f   : > { %563 = shalt.err (!%p560_p10)
}
 0x220   : > { %s564_s15 = scalar_lea.hbm %s829_s7, 128  ;;  %s568_s8 = scalar_lea.hbm %s878_s5, 256 }
 0x221   : > { %p565_p1 = scmp.ne.s32.totalorder %s829_s7, %s564_s15  ;;  %p569_p3 = scmp.lt.u32.totalorder %s829_s7, %s878_s5 }
 0x222   : > { %p570_p11 = scmp.lt.u32.totalorder %s568_s8, %s564_s15  ;;  %p572_p6 = scmp.lt.u32.totalorder %s564_s15, %s829_s7 }
 0x223   : > { %p566_p2 = pnand %p565_p1, %p749_p8 }
 0x224   : > { %p571_p4 = por %p570_p11, %p569_p3 }
 0x225   : > { %p567_p7 = pneg %p566_p2 }
 0x226   : > { %p573_p9 = por %p572_p6, %p571_p4 }
 0x228   : > { %p574_p12 = pnand %p573_p9, %p567_p7 }
 0x22a   : > { %577 = shalt.err (!%p574_p12)
}
 0x22b   : > { %436 = dma.vmem_to_hbm [thread:$0]  (%p749_p8), %s831_s6, 128, %s829_s7, %s317_s17  }
 0x22c PF: > { %s343_s9 = sand.u32 1, %s608_s18   ;;  %p897_p13 = scmp.ne.s32.totalorder %s883_s25, 0 }
 0x22d   : > { %p898_p0 = scmp.ge.s32.totalorder %s620_s21, 2  ;;  %s344_s10 = scalar_lea.sflag [#allocation4], %s343_s9 }
 0x22f   : > { %p447_p5 = pnand %p898_p0, %p897_p13 }
 0x231   : > { %603 = dma.done.wait (!%p447_p5), %s344_s10, 128  }
 0x232   : > { %605 = vsyncadd (!%p447_p5), %s344_s10, 4294967168  ;;  %p19_p10 = scmp.ge.s32.totalorder %s705_s29, 4   ;;  %s899_s18 = smov %s612_s19 }
 0x233   : > { %s900_s19 = smov %s616_s20  ;;  %s901_s20 = smov %s741_s27 }
 0x234   : > { %s902_s21 = smov %s705_s29  ;;  %21 = sbr.rel (!%p19_p10) target bundleno = 6 (0x6), region = 89 }
 0x23b   :  { %349 = vsyncpa [#allocation3], 1 }
 0x23c   :  { %351 = vsyncpa [#allocation3 + $0x1], 1 }
 0x23d   :  { %352 = vsyncpa [#allocation6], 1 }
 0x23e   :  { %353 = vsyncpa [#allocation4], 1 }
 0x23f   :  { %355 = vsyncpa [#allocation4 + $0x1], 1 }

</bundles_post_ra>
